<compile_context>
chip_gen: v5e
topology: v5e:2x2
jax: 0.10.0
libtpu: 0.0.40
codegen_flags: <defaults>
</compile_context>

<pallas_src>
import math

import jax
import jax.numpy as jnp
from jax import lax
from jax.experimental import pallas as pl
from jax.experimental.pallas import tpu as pltpu


# ----------------------------- helpers ---------------------------------------


def _round_up(x, m):
    return ((x + m - 1) // m) * m


def _pick_tile(dim, max_tile):
    """Largest divisor of `dim` that is a multiple of 8 and <= max_tile.
    Falls back to the full dim (block == full array dim satisfies the
    (8,128) rule)."""
    cands = [t for t in range(8, min(dim, max_tile) + 1, 8) if dim % t == 0]
    return cands[-1] if cands else dim


def _tpu_hw():
    """Best-effort (VMEM capacity bytes, dual-TensorCore?) query."""
    vmem_cap = None
    dual_core = False
    try:
        kind = getattr(jax.devices()[0], "device_kind", "").lower()
        if "v7" in kind:
            dual_core = True
            vmem_cap = 64 * 1024 * 1024
        elif ("v4" in kind) or ("v5" in kind) or ("v6" in kind):
            vmem_cap = 128 * 1024 * 1024
        elif ("v2" in kind) or ("v3" in kind):
            vmem_cap = 16 * 1024 * 1024
    except Exception:
        pass
    try:
        cap = getattr(pltpu.get_tpu_info(), "vmem_capacity_bytes", None)
        if cap:
            vmem_cap = int(cap)
    except Exception:
        pass
    if vmem_cap is None:
        vmem_cap = 64 * 1024 * 1024  # conservative (v7x-sized) fallback
    return vmem_cap, dual_core


def _softmax_block(x):
    """Softmax over the combined (axis 0, axis 2) seq axes of an
    (nl, TB, TL) lane-dense score block (sequential single-axis reductions)."""
    m = jnp.max(x, axis=2, keepdims=True)
    m = jnp.max(m, axis=0, keepdims=True)
    p = jnp.exp(x - m)
    s = jnp.sum(p, axis=2, keepdims=True)
    s = jnp.sum(s, axis=0, keepdims=True)
    return p / s


# ----------------------------- kernels ----------------------------------------
# Grid = (batch tiles i [parallel], seq tiles j [arbitrary]).
# Refs per step:
#   h_ref : (TB, H)          decoder-state tile (resident across j)
#   e_ref : (TL, TB, H)      encoder tile, native (L, B, H) layout (H on lanes)
#   o_ref : (nl, TB, TL)     lane-dense score block, resident across j
# Each seq step writes its (TB, TL) slab at o_ref[j]; the last j step applies
# the softmax over the whole resident block in VMEM.


def _dot_attn_kernel(h_ref, e_ref, o_ref):
    j = pl.program_id(1)
    s = jnp.sum(h_ref[...][None, :, :] * e_ref[...], axis=-1)          # (TL, TB)
    o_ref[j] = jnp.transpose(s)                                        # lane-dense (TB, TL)

    @pl.when(j == pl.num_programs(1) - 1)
    def _():
        o_ref[...] = _softmax_block(o_ref[...])


def _general_attn_kernel(h_ref, e_ref, w_ref, b_ref, o_ref, hw_sc, hb_sc):
    j = pl.program_id(1)

    @pl.when(j == 0)
    def _():
        h = h_ref[...]
        # Fold the Linear into the decoder state once per batch tile:
        #   score[l, b] = e[l, b, :] . (h[b, :] @ W) + h[b, :] . bias
        # The remaining (TB,H)x(H,H) matmul is tiny -> keep it full precision.
        hw_sc[...] = jnp.dot(h, w_ref[...],
                             preferred_element_type=jnp.float32,
                             precision=lax.Precision.HIGHEST)
        hb_sc[...] = jnp.sum(h * b_ref[...], axis=1, keepdims=True)    # (TB, 1)

    s = jnp.sum(hw_sc[...][None, :, :] * e_ref[...], axis=-1)          # (TL, TB)
    o_ref[j] = jnp.transpose(s) + hb_sc[...]

    @pl.when(j == pl.num_programs(1) - 1)
    def _():
        o_ref[...] = _softmax_block(o_ref[...])


def _concat_attn_kernel(h_ref, e_ref, whT_ref, weT_ref, b_ref, v_ref, o_ref, hid_sc):
    j = pl.program_id(1)
    tl, tb, hdim = e_ref.shape

    @pl.when(j == 0)
    def _():
        # hidden part of cat([hidden, enc]) @ W.T + b, computed once per batch
        # tile; tiny matmul -> keep HIGHEST.  Weights are pre-transposed so the
        # MXU consumes them in natural orientation.
        hid_sc[...] = jnp.dot(h_ref[...], whT_ref[...],
                              preferred_element_type=jnp.float32,
                              precision=lax.Precision.HIGHEST) + b_ref[...]

    # Encoder part: (TL*TB, H) @ WeT.  Dominant matmul -> Precision.HIGH
    # (~half the MXU passes of HIGHEST, effectively-f32 accuracy).
    e2 = e_ref[...].reshape(tl * tb, hdim)
    enc_part = jnp.dot(e2, weT_ref[...],
                       preferred_element_type=jnp.float32,
                       precision=lax.Precision.HIGH).reshape(tl, tb, hdim)
    energy = jnp.tanh(hid_sc[...][None, :, :] + enc_part)              # (TL, TB, H)
    s = jnp.sum(v_ref[...][None, :, :] * energy, axis=-1)              # (TL, TB)
    o_ref[j] = jnp.transpose(s)

    @pl.when(j == pl.num_programs(1) - 1)
    def _():
        o_ref[...] = _softmax_block(o_ref[...])


# ----------------------------- wrapper ----------------------------------------


class BrsoffAttn:
    """JAX/Pallas port of brsoff_Attn.  Methods: 'dot' | 'general' | 'concat'."""

    def __init__(self, method, hidden_size, key):
        if method not in ("dot", "general", "concat"):
            raise ValueError(method, "is not an appropriate attention method.")
        self.method = method
        self.hidden_size = hidden_size
        H = hidden_size
        if method == "general":
            k0, k1 = jax.random.split(key)
            bound = 1.0 / math.sqrt(H)
            self.W = jax.random.uniform(k0, (H, H), jnp.float32, -bound, bound)
            self.b = jax.random.uniform(k1, (H,), jnp.float32, -bound, bound)
            self.b2d = self.b.reshape(1, H)
        elif method == "concat":
            k0, k1, k2 = jax.random.split(key, 3)
            bound = 1.0 / math.sqrt(2 * H)
            self.W = jax.random.uniform(k0, (H, 2 * H), jnp.float32, -bound, bound)
            self.b = jax.random.uniform(k1, (H,), jnp.float32, -bound, bound)
            self.v = jax.random.normal(k2, (H,), jnp.float32)
            # Pre-transposed weight halves: no in-kernel relayout of the
            # stationary MXU operand, no per-call slicing.
            self.WhT = jnp.asarray(self.W[:, :H].T)       # hidden part, (H, H)
            self.WeT = jnp.asarray(self.W[:, H:].T)       # encoder part, (H, H)
            self.b2d = self.b.reshape(1, H)
            self.v2d = self.v.reshape(1, H)

    def __call__(self, hidden, encoder_outputs, *, batch_tile=None, seq_tile=None):
        # hidden: (1, B, H), encoder_outputs: (L, B, H)
        L, B, H = encoder_outputs.shape
        h_bh = hidden[0].astype(jnp.float32)                 # (B, H) — tiny
        e_lbh = encoder_outputs.astype(jnp.float32)          # (L, B, H) — native layout

        # ---- generation-aware VMEM budget -------------------------------------
        vmem_cap, dual_core = _tpu_hw()
        vmem_limit = int(min(vmem_cap * 3 // 4, 100 * 1024 * 1024))   # ~96 MiB v5e/v6e, ~48 MiB v7x

        # ---- batch tile: full B on single-core chips; >=2 tiles on v7x --------
        if batch_tile is not None:
            TB = batch_tile
        elif dual_core:
            TB = _pick_tile(B, max(8, B // 2))    # nb >= 2 when B allows it
        else:
            TB = B

        # ---- seq tile: largest divisor whose lane-padded footprint fits -------
        Hp = _round_up(H, 128)                    # lane padding of the last dim
        TBp = _round_up(TB, 8)                    # sublane padding
        Lp = _round_up(L, 128)
        fixed = 4 * (2 * TBp * Lp                 # resident score block (dbl-buffered bound)
                     + 2 * TBp * Hp               # hidden block
                     + 4 * _round_up(H, 8) * Hp   # up to two (H,H) weight blocks, dbl-buffered
                     + 4 * Hp                     # small vector blocks
                     + TBp * Hp + 8 * TBp         # scratches
                     ) + 2 * 1024 * 1024          # slack for compiler-internal scratch
        # Per unit of TL: 2 DMA buffers of the e block + in-kernel (TL,TB,H)
        # f32 temporaries (1 for dot/general, ~3 for concat).
        n_tmp = 3 if self.method == "concat" else 1
        per_tl = (2 + n_tmp) * TBp * Hp * 4
        tl_cap = max(8, (vmem_limit - fixed) // per_tl)
        TL = seq_tile if seq_tile is not None else _pick_tile(L, min(L, tl_cap))

        assert B % TB == 0 and (TB == B or TB % 8 == 0), (B, TB)
        assert L % TL == 0 and (TL == L or TL % 8 == 0), (L, TL)
        nb, nl = B // TB, L // TL

        h_spec = pl.BlockSpec((TB, H), lambda i, j: (i, 0))
        e_spec = pl.BlockSpec((TL, TB, H), lambda i, j: (j, i, 0))
        mat_spec = pl.BlockSpec((H, H), lambda i, j: (0, 0))
        vec_spec = pl.BlockSpec((1, H), lambda i, j: (0, 0))
        # One lane-dense (nl, TB, TL) score block per batch tile, resident
        # across the seq axis; seq step j owns slab o_ref[j].
        o_spec = pl.BlockSpec((None, nl, TB, TL), lambda i, j: (i, 0, 0, 0))
        out_shape = jax.ShapeDtypeStruct((nb, nl, TB, TL), jnp.float32)

        cparams = pltpu.CompilerParams(
            dimension_semantics=("parallel", "arbitrary"),
            vmem_limit_bytes=vmem_limit,
        )

        if self.method == "dot":
            grid_spec = pltpu.PrefetchScalarGridSpec(
                num_scalar_prefetch=0, grid=(nb, nl),
                in_specs=[h_spec, e_spec], out_specs=o_spec)
            cost = pl.CostEstimate(
                flops=2 * B * L * H, transcendentals=B * L,
                bytes_accessed=4 * (L * B * H + B * H + B * L))
            out4 = pl.pallas_call(
                _dot_attn_kernel, out_shape=out_shape, grid_spec=grid_spec,
                compiler_params=cparams, cost_estimate=cost,
            )(h_bh, e_lbh)
        elif self.method == "general":
            grid_spec = pltpu.PrefetchScalarGridSpec(
                num_scalar_prefetch=0, grid=(nb, nl),
                in_specs=[h_spec, e_spec, mat_spec, vec_spec], out_specs=o_spec,
                scratch_shapes=[pltpu.VMEM((TB, H), jnp.float32),
                                pltpu.VMEM((TB, 1), jnp.float32)])
            cost = pl.CostEstimate(
                flops=2 * B * H * H + 2 * B * L * H, transcendentals=B * L,
                bytes_accessed=4 * (L * B * H + B * H + H * H + H + B * L))
            out4 = pl.pallas_call(
                _general_attn_kernel, out_shape=out_shape, grid_spec=grid_spec,
                compiler_params=cparams, cost_estimate=cost,
            )(h_bh, e_lbh, self.W, self.b2d)
        else:  # concat
            grid_spec = pltpu.PrefetchScalarGridSpec(
                num_scalar_prefetch=0, grid=(nb, nl),
                in_specs=[h_spec, e_spec, mat_spec, mat_spec, vec_spec, vec_spec],
                out_specs=o_spec,
                scratch_shapes=[pltpu.VMEM((TB, H), jnp.float32)])
            cost = pl.CostEstimate(
                flops=2 * B * L * H * H + 2 * B * H * H + 4 * B * L * H,
                transcendentals=B * L * H + B * L,
                bytes_accessed=4 * (L * B * H + B * H + 2 * H * H + 2 * H + B * L))
            out4 = pl.pallas_call(
                _concat_attn_kernel, out_shape=out_shape, grid_spec=grid_spec,
                compiler_params=cparams, cost_estimate=cost,
            )(h_bh, e_lbh, self.WhT, self.WeT, self.b2d, self.v2d)

        # (nb, nl, TB, TL) -> (B, L) -> (B, 1, L).  Only the tiny score tensor
        # moves; with nl == 1 (the common case once tiles are enlarged) the
        # transpose is a no-op reshape.
        attn = jnp.transpose(out4, (0, 2, 1, 3)).reshape(B, L)
        return attn[:, None, :]


# ----------------------------- reference (plain JAX) --------------------------


def ref_forward(module, hidden, encoder_outputs):
    if module.method == "dot":
        scores = jnp.sum(hidden * encoder_outputs, axis=2)                 # (L, B)
    elif module.method == "general":
        energy = encoder_outputs @ module.W.T + module.b
        scores = jnp.sum(hidden * energy, axis=2)
    else:
        x = jnp.concatenate(
            [jnp.broadcast_to(hidden, encoder_outputs.shape), encoder_outputs], axis=2)
        energy = jnp.tanh(x @ module.W.T + module.b)
        scores = jnp.sum(module.v * energy, axis=2)
    return jax.nn.softmax(scores.T, axis=1)[:, None, :]                    # (B, 1, L)


# ----------------------------- main --------------------------------------------

if __name__ == "__main__":
    key = jax.random.PRNGKey(0)
    k_h, k_e, k_p = jax.random.split(key, 3)

    # (B, L, H, batch_tile, seq_tile).  The second config forces a real
    # multi-block grid (2 batch tiles x 2 seq tiles) to exercise the resident
    # lane-dense output / per-slab stores / pl.when finalize; the first
    # exercises the small-B fallback (TB == B < 8, single block).
    configs = [
        (2, 8, 32, None, None),
        (16, 16, 32, 8, 8),
    ]

    for (B, L, H, bt, st) in configs:
        hidden = jax.random.normal(k_h, (1, B, H), jnp.float32)
        encoder_outputs = jax.random.normal(k_e, (L, B, H), jnp.float32)
        for method in ("dot", "general", "concat"):
            mod = BrsoffAttn(method, H, k_p)
            out = jax.block_until_ready(
                mod(hidden, encoder_outputs, batch_tile=bt, seq_tile=st))
            ref = ref_forward(mod, hidden, encoder_outputs)
            assert out.shape == (B, 1, L), (method, out.shape)
            err = float(jnp.max(jnp.abs(out - ref)))
            assert jnp.allclose(out, ref, rtol=1e-4, atol=1e-5), (method, B, L, H, err)

    print("KERNEL_OK")
</pallas_src>

<mosaic_0001>
module attributes {stable_mosaic.version = 11 : i64} {
  func.func @_dot_attn_kernel(%arg0: i32, %arg1: i32, %arg2: memref<2x32xf32, #tpu.memory_space<vmem>>, %arg3: memref<8x2x32xf32, #tpu.memory_space<vmem>>, %arg4: memref<1x1x2x8xf32, #tpu.memory_space<vmem>>) attributes {dimension_semantics = [#tpu.dimension_semantics<parallel>, #tpu.dimension_semantics<arbitrary>], iteration_bounds = array<i64: 1, 1>, scalar_prefetch = 0 : i64, scratch_operands = 0 : i64, tpu.core_type = #tpu.core_type<tc>, window_params = [{transform_indices = @transform_0, window_bounds = array<i64: 2, 32>}, {transform_indices = @transform_1, window_bounds = array<i64: 8, 2, 32>}, {transform_indices = @transform_2, window_bounds = array<i64: 1, 1, 2, 8>}]} {
    %c0 = arith.constant 0 : index
    %c0_0 = arith.constant 0 : index
    %0 = vector.load %arg2[%c0, %c0_0] : memref<2x32xf32, #tpu.memory_space<vmem>>, vector<2x32xf32>
    %1 = vector.shape_cast %0 : vector<2x32xf32> to vector<1x2x32xf32>
    %c0_1 = arith.constant 0 : index
    %c0_2 = arith.constant 0 : index
    %c0_3 = arith.constant 0 : index
    %2 = vector.load %arg3[%c0_1, %c0_2, %c0_3] : memref<8x2x32xf32, #tpu.memory_space<vmem>>, vector<8x2x32xf32>
    %3 = vector.broadcast %1 : vector<1x2x32xf32> to vector<8x2x32xf32>
    %4 = arith.mulf %3, %2 : vector<8x2x32xf32>
    %cst = arith.constant dense<0.000000e+00> : vector<8x2xf32>
    %5 = vector.multi_reduction <add>, %4, %cst [2] : vector<8x2x32xf32> to vector<8x2xf32>
    %6 = tpu.transpose %5, [1, 0] : vector<8x2xf32> -> vector<2x8xf32>
    %c0_4 = arith.constant 0 : index
    %7 = arith.index_cast %arg1 : i32 to index
    %c0_5 = arith.constant 0 : index
    %c0_6 = arith.constant 0 : index
    %8 = vector.load %arg4[%c0_4, %7, %c0_5, %c0_6] : memref<1x1x2x8xf32, #tpu.memory_space<vmem>>, vector<1x1x2x8xf32>
    %9 = vector.shape_cast %8 : vector<1x1x2x8xf32> to vector<2x8xf32>
    %10 = vector.shape_cast %6 : vector<2x8xf32> to vector<1x1x2x8xf32>
    tpu.vector_store %arg4[%c0_4, %7, %c0_5, %c0_6], %10 {strides = array<i32>} : memref<1x1x2x8xf32, #tpu.memory_space<vmem>>, vector<1x1x2x8xf32>,
    %c0_i32 = arith.constant 0 : i32
    %11 = arith.cmpi eq, %arg1, %c0_i32 : i32
    %12 = arith.extui %11 : i1 to i32
    %c0_i32_7 = arith.constant 0 : i32
    %13 = arith.cmpi ne, %12, %c0_i32_7 : i32
    scf.if %13 {
      %c0_8 = arith.constant 0 : index
      %c0_9 = arith.constant 0 : index
      %c0_10 = arith.constant 0 : index
      %c0_11 = arith.constant 0 : index
      %14 = vector.load %arg4[%c0_8, %c0_9, %c0_10, %c0_11] : memref<1x1x2x8xf32, #tpu.memory_space<vmem>>, vector<1x1x2x8xf32>
      %15 = vector.shape_cast %14 : vector<1x1x2x8xf32> to vector<1x2x8xf32>
      %cst_12 = arith.constant dense<0xFF800000> : vector<1x2xf32>
      %16 = vector.multi_reduction <maximumf>, %15, %cst_12 [2] : vector<1x2x8xf32> to vector<1x2xf32>
      %17 = vector.shape_cast %16 : vector<1x2xf32> to vector<1x2x1xf32>
      %cst_13 = arith.constant dense<0xFF800000> : vector<2x1xf32>
      %18 = vector.multi_reduction <maximumf>, %17, %cst_13 [0] : vector<1x2x1xf32> to vector<2x1xf32>
      %19 = vector.shape_cast %18 : vector<2x1xf32> to vector<1x2x1xf32>
      %20 = vector.broadcast %19 : vector<1x2x1xf32> to vector<1x2x8xf32>
      %21 = arith.subf %15, %20 : vector<1x2x8xf32>
      %22 = math.exp %21 : vector<1x2x8xf32>
      %cst_14 = arith.constant dense<0.000000e+00> : vector<1x2xf32>
      %23 = vector.multi_reduction <add>, %22, %cst_14 [2] : vector<1x2x8xf32> to vector<1x2xf32>
      %24 = vector.shape_cast %23 : vector<1x2xf32> to vector<1x2x1xf32>
      %cst_15 = arith.constant dense<0.000000e+00> : vector<2x1xf32>
      %25 = vector.multi_reduction <add>, %24, %cst_15 [0] : vector<1x2x1xf32> to vector<2x1xf32>
      %26 = vector.shape_cast %25 : vector<2x1xf32> to vector<1x2x1xf32>
      %27 = vector.broadcast %26 : vector<1x2x1xf32> to vector<1x2x8xf32>
      %28 = arith.divf %22, %27 : vector<1x2x8xf32>
      %c0_16 = arith.constant 0 : index
      %c0_17 = arith.constant 0 : index
      %c0_18 = arith.constant 0 : index
      %c0_19 = arith.constant 0 : index
      %29 = vector.load %arg4[%c0_16, %c0_17, %c0_18, %c0_19] : memref<1x1x2x8xf32, #tpu.memory_space<vmem>>, vector<1x1x2x8xf32>
      %30 = vector.shape_cast %29 : vector<1x1x2x8xf32> to vector<1x2x8xf32>
      %31 = vector.shape_cast %28 : vector<1x2x8xf32> to vector<1x1x2x8xf32>
      tpu.vector_store %arg4[%c0_16, %c0_17, %c0_18, %c0_19], %31 {strides = array<i32>} : memref<1x1x2x8xf32, #tpu.memory_space<vmem>>, vector<1x1x2x8xf32>,
    } else {
    }
    return
  }
  func.func @transform_0(%arg0: i32, %arg1: i32) -> (i32, i32) {
    %c0_i32 = arith.constant 0 : i32
    %c0_i32_0 = arith.constant 0 : i32
    return %arg0, %c0_i32 : i32, i32
  }
  func.func @transform_1(%arg0: i32, %arg1: i32) -> (i32, i32, i32) {
    %c0_i32 = arith.constant 0 : i32
    %c0_i32_0 = arith.constant 0 : i32
    return %arg1, %arg0, %c0_i32 : i32, i32, i32
  }
  func.func @transform_2(%arg0: i32, %arg1: i32) -> (i32, i32, i32, i32) {
    %c0_i32 = arith.constant 0 : i32
    %c0_i32_0 = arith.constant 0 : i32
    %c0_i32_1 = arith.constant 0 : i32
    %c0_i32_2 = arith.constant 0 : i32
    return %arg0, %c0_i32, %c0_i32_0, %c0_i32_1 : i32, i32, i32, i32
  }
}

</mosaic_0001>

<bundles_post_ra>
// kernel: tpu_custom_call.1
= control target key start
LH: loop header
LB: loop body
LE: loop exit
PB: predicated region body
PF: predicated region fallthrough
CT: control target
= control target key end

     0   :  { %7 = vsyncpa [#allocation3], 0  ;;  %s331_s0 = inlined_call_operand.hbm [shape: f32[2,32], index: 0, kind: input, shape index: {}]   ;;  %s332_s1 = inlined_call_operand.hbm [shape: f32[8,2,32], index: 1, kind: input, shape index: {}]   ;;  %s333_s2 = inlined_call_operand.hbm [shape: f32[1,1,2,8], index: 2, kind: output, shape index: {}]  }
   0x1   :  { %8 = vsyncpa [#allocation6], 0 }
   0x2   :  { %9 = vsyncpa [#allocation4], 0  ;;  %s15_s11 = sshll.u32 %s331_s0, 4  ;;  %s290_s12 = smov [#allocation2]   ;;  %s16_s11 = int_to_ptr.hbm [resolvable:$true] %s15_s11 }
   0x3   :  { %s17_s13 = sshll.u32 %s290_s12, 4  ;;  %s25_s16 = sshll.u32 %s332_s1, 4  ;;  %s18_s13 = int_to_ptr.vmem [resolvable:$true] %s17_s13  ;;  %s26_s16 = int_to_ptr.hbm [resolvable:$true] %s25_s16 }
   0x4   :  { %20 = dma.hbm_to_vmem [thread:$0]  %s16_s11, 32, %s18_s13, [#allocation3]  }
   0x5   :  { %s291_s17 = smov [#allocation5]   ;;  %s292_s19 = smov 32  }
   0x6   :  { %s27_s18 = sshll.u32 %s291_s17, 4  ;;  %s293_s20 = smov 2   ;;  %s28_s18 = int_to_ptr.vmem [resolvable:$true] %s27_s18 }
   0x7   :  { %33 = dma.hbm_to_vmem [thread:$0]  %s26_s16, 256, %s28_s18, [#allocation6], %s292_s19, %s292_s19, %s293_s20  }
   0x8   :  { %284 = dma.done.wait [#allocation3], 32  }
   0x9   :  { %285 = vsyncadd [#allocation3], 4294967264 }
   0xa   :  { %286 = dma.done.wait [#allocation6], 256  }
   0xb   :  { %287 = vsyncadd [#allocation6], 4294967040  ;;  %vm59_vm0 = vcmask 254976   ;;  %v42_v0 = vld [vmem:[#allocation2] sm:$0x3]  ;;  %v92_v27 = vlaneseq  ;;  %vm102_vm1 = vcmask 1041409  }
   0xc   :  { %v43_v1 = vld [vmem:[#allocation5] sm:$0x3]  ;;  %v45_v2 = vld [vmem:[#allocation5 + $0x4] sm:$0x3]  ;;  %v47_v5 = vld [vmem:[#allocation5 + $0x8] sm:$0x3] }
   0xd   :  { %v51_v3 = vmul.f32 %v43_v1, %v42_v0  ;;  %v53_v4 = vmul.f32 %v45_v2, %v42_v0  ;;  %v55_v6 = vmul.f32 %v47_v5, %v42_v0  ;;  %v44_v7 = vld [vmem:[#allocation5 + $0x2] sm:$0x3]  ;;  %v46_v8 = vld [vmem:[#allocation5 + $0x6] sm:$0x3]  ;;  %v48_v11 = vld [vmem:[#allocation5 + $0xa] sm:$0x3] }
   0xe   :  { %v52_v13 = vmul.f32 %v44_v7, %v42_v0  ;;  %v54_v14 = vmul.f32 %v46_v8, %v42_v0  ;;  %v56_v15 = vmul.f32 %v48_v11, %v42_v0  ;;  %v49_v19 = vld [vmem:[#allocation5 + $0xc] sm:$0x3]  ;;  %v50_v20 = vld [vmem:[#allocation5 + $0xe] sm:$0x3]  ;;  %v93_v29 = vand.u32 127, %v92_v27  ;;  %s294_s0 = smov [#allocation7]  }
   0xf   :  { %v60_v9 = vsel %vm59_vm0, %v51_v3, 0.0  ;;  %v66_v10 = vsel %vm59_vm0, %v53_v4, 0.0  ;;  %v72_v12 = vsel %vm59_vm0, %v55_v6, 0.0  ;;  %v57_v21 = vmul.f32 %v49_v19, %v42_v0  ;;  %s189_s1 = sshll.u32 %s294_s0, 4  ;;  %s191_s23 = sshll.u32 %s333_s2, 4  ;;  %s190_s1 = int_to_ptr.vmem [resolvable:$true] %s189_s1  ;;  %s192_s23 = int_to_ptr.hbm [resolvable:$true] %s191_s23 }
  0x10   :  { %61 = vadd.xlane.f32.xlu0 %v60_v9  ;;  %67 = vadd.xlane.f32.xlu1 %v66_v10  ;;  %v63_v16 = vsel %vm59_vm0, %v52_v13, 0.0  ;;  %v69_v17 = vsel %vm59_vm0, %v54_v14, 0.0  ;;  %v75_v18 = vsel %vm59_vm0, %v56_v15, 0.0  ;;  %v58_v22 = vmul.f32 %v50_v20, %v42_v0 }
  0x11   :  { %73 = vadd.xlane.f32.xlu2 %v72_v12  ;;  %v78_v23 = vsel %vm59_vm0, %v57_v21, 0.0  ;;  %vm104_vm2 = vcmask 1042434   ;;  %vm106_vm3 = vcmask 1043459   ;;  %vm108_vm4 = vcmask 1044484  }
  0x12   :  { %v81_v24 = vsel %vm59_vm0, %v58_v22, 0.0  ;;  %vm110_vm5 = vcmask 1045509   ;;  %vm112_vm6 = vcmask 1046534   ;;  %vm114_vm7 = vcmask 1047559  }
  0x13   :  { %vm151_vm8 = vcmask 58368  }
  0x18   :  { %64 = vadd.xlane.f32.xlu0 %v63_v16  ;;  %70 = vadd.xlane.f32.xlu1 %v69_v17 }
  0x19   :  { %76 = vadd.xlane.f32.xlu2 %v75_v18 }
  0x20   :  { %79 = vadd.xlane.f32.xlu0 %v78_v23  ;;  %82 = vadd.xlane.f32.xlu1 %v81_v24 }
  0x83   :  { %v62_v25 = vpop.xlane.xlu0 %61  ;;  %v68_v26 = vpop.xlane.xlu1 %67 }
  0x84   :  { %v74_v28 = vpop.xlane.xlu2 %73  ;;  %v94_v32 = vperm.slane %v62_v25, %v93_v29  ;;  %v96_v35 = vperm.slane %v68_v26, %v93_v29 }
  0x85   :  { %v98_v39 = vperm.slane %v74_v28, %v93_v29 }
  0x8b   :  { %v65_v30 = vpop.xlane.xlu0 %64  ;;  %v71_v31 = vpop.xlane.xlu1 %70 }
  0x8c   :  { %v95_v33 = vperm.slane %v65_v30, %v93_v29  ;;  %v97_v34 = vperm.slane %v71_v31, %v93_v29  ;;  %v77_v37 = vpop.xlane.xlu2 %76 }
  0x8d   :  { %v99_v41 = vperm.slane %v77_v37, %v93_v29 }
  0x8e   :  { %v103_v36 = vsel %vm102_vm1, %v95_v33, %v94_v32 }
  0x8f   :  { %v105_v38 = vsel %vm104_vm2, %v96_v35, %v103_v36 }
  0x90   :  { %v107_v40 = vsel %vm106_vm3, %v97_v34, %v105_v38 }
  0x91   :  { %v109_v42 = vsel %vm108_vm4, %v98_v39, %v107_v40 }
  0x92   :  { %v111_v47 = vsel %vm110_vm5, %v99_v41, %v109_v42 }
  0x93   :  { %v80_v43 = vpop.xlane.xlu0 %79  ;;  %v83_v44 = vpop.xlane.xlu1 %82 }
  0x94   :  { %v100_v45 = vperm.slane %v80_v43, %v93_v29  ;;  %v101_v46 = vperm.slane %v83_v44, %v93_v29 }
  0x96   :  { %v113_v48 = vsel %vm112_vm6, %v100_v45, %v111_v47 }
  0x97   :  { %v115_v49 = vsel %vm114_vm7, %v101_v46, %v113_v48 }
  0x98   :  { %117 = vxpose.xlu2.b32.start.end [1/1] (short) (narrow) %v115_v49, 8 }
 0x131   :  { %v133_v50 = vpop.trf.xlu2 }
 0x132   :  { %152 = vst.msk [vmem:[#allocation7] sm:$0x3] %vm151_vm8, %v133_v50 }
 0x139   :  { %v157_v51 = vld [vmem:[#allocation7] sm:$0x3] }
 0x13a   :  { %v158_v52 = vsel %vm151_vm8, %v157_v51, -inf }
 0x13b   :  { %159 = vmax.xlane.f32.xlu0 %v158_v52 }
 0x1ae   :  { %v160_v53 = vpop.xlane.xlu0 %159 }
 0x1af   :  { %v161_v54 = vsub.f32 %v157_v51, %v160_v53 }
 0x1b1   :  { %v162_v55 = vmul.f32 1.442695, %v161_v54 }
 0x1b3   :  { %208 = vpow2.f32 %v162_v55 }
 0x1b9   :  { %v209_v56 = vpop.eup %208 }
 0x1ba   :  { %v164_v57 = vsel %vm151_vm8, %v209_v56, 0.0 }
 0x1bb   :  { %165 = vadd.xlane.f32.xlu1 %v164_v57 }
 0x22e   :  { %v166_v58 = vpop.xlane.xlu1 %165 }
 0x22f   :  { %210 = vrcp.f32 %v166_v58  ;;  %v179_v62 = vand.u32 2147483648, %v166_v58  ;;  %v177_v0 = vand.u32 2147483647, %v166_v58  ;;  %vm173_vm10 = vweird.f32 %v166_v58 }
 0x231   :  { %v180_v2 = vor.u32 1.1754944e-38, %v179_v62  ;;  %vm178_vm12 = vcmp.eq.f32.partialorder %v177_v0, 8.507059e+37 }
 0x235   :  { %v211_v59 = vpop.eup %210 }
 0x236   :  { %v169_v60 = vmul.f32 %v211_v59, %v166_v58  ;;  %vm174_vm9 = vweird.f32 %v211_v59 }
 0x237   :  { %vm175_vm11 = vmor %vm173_vm10, %vm174_vm9 }
 0x238   :  { %v170_v61 = vsub.f32 1.0, %v169_v60 }
 0x23a   :  { %v171_v63 = vmul.f32 %v211_v59, %v170_v61 }
 0x23c   :  { %v172_v1 = vadd.f32 %v211_v59, %v171_v63 }
 0x23e   :  { %v176_v3 = vsel %vm175_vm11, %v211_v59, %v172_v1 }
 0x23f   :  { %v181_v4 = vsel %vm178_vm12, %v180_v2, %v176_v3 }
 0x240   :  { %v182_v5 = vmul.f32 %v209_v56, %v181_v4 }
 0x242   :  { %183 = vst.msk [vmem:[#allocation7] sm:$0x3] %vm151_vm8, %v182_v5 }
 0x243   :  { %194 = dma.vmem_to_hbm [thread:$0]  %s190_s1, 32, %s192_s23, [#allocation4]  }
 0x244   :  { %288 = dma.done.wait [#allocation4], 32  }
 0x245   :  { %289 = vsyncadd [#allocation4], 4294967264 }
 0x246   :  { %199 = vsyncpa [#allocation3], 1 }
 0x247   :  { %200 = vsyncpa [#allocation6], 1 }
 0x248   :  { %201 = vsyncpa [#allocation4], 1 }

</bundles_post_ra>
